<compile_context>
chip_gen: v6e
topology: v6e:2x2x1
jax: 0.10.0
libtpu: 0.0.40
codegen_flags: <defaults>
</compile_context>

<pallas_src>
import functools

import jax
import jax.numpy as jnp
from jax.experimental import pallas as pl
from jax.experimental.pallas import tpu as pltpu

_MIB = 1024 * 1024


def _normalize_kernel(x_ref, o_ref, *, power):
    # x_ref block: (1, C, T).  Reduction over C is per-lane independent, so
    # masked/padded lanes on the last partial block never affect valid lanes.
    xf = x_ref[...].astype(jnp.float32)
    shifted = xf + 1e-07

    if power == 2:
        # Fast path: VPU multiplies + one EUP rsqrt per lane element.
        s = jnp.sum(shifted * shifted, axis=1, keepdims=True)   # (1, 1, T)
        inv = jax.lax.rsqrt(s)                                   # (1, 1, T)
    else:
        s = jnp.sum(shifted ** power, axis=1, keepdims=True)     # (1, 1, T)
        # Single EUP pow: s ** (-1/p) == 1 / (s ** (1/p)), no approx error.
        inv = s ** (-1.0 / power)

    # One broadcasted VPU multiply per element (no per-element divide).
    o_ref[...] = (xf * inv).astype(o_ref.dtype)


def _vmem_capacity_bytes():
    """Physical per-core VMEM, with a conservative fallback (v7x = 64 MiB)."""
    try:
        info = pltpu.get_tpu_info()
        cap = int(getattr(info, "vmem_capacity_bytes", 0))
        if cap > 0:
            return cap
    except Exception:
        pass
    return 64 * _MIB


def _pick_spatial_tile(B, C, HW, itemsize):
    """Pick lane-tile T (multiple of 128 when possible) from a VMEM budget."""
    cap = _vmem_capacity_bytes()
    # Generation-aware budget: ~1/3 of physical VMEM, clamped to [8, 40] MiB.
    #   v7x (64 MiB)  -> ~21 MiB total footprint
    #   v5e/v6e (128) -> 40 MiB
    budget = max(8 * _MIB, min(40 * _MIB, cap // 3))

    # Sublane padding of a (1, C, T) tile: C pads to 8 (f32), 16 (bf16), 32 (i8).
    sub = 8 * max(1, 4 // max(1, itemsize))
    c_pad = -(-C // sub) * sub
    c_pad_f32 = -(-C // 8) * 8

    # Per-lane-column footprint:
    #   in + out double-buffered (input dtype) + ~2 live f32 intermediates.
    per_lane = 4 * c_pad * itemsize + 2 * c_pad_f32 * 4
    max_t = max(128, (budget // per_lane) // 128 * 128)

    if HW % 128 == 0:
        t = min(HW, max_t)
    elif HW > 128:
        # Keep T a multiple of 128; last block is partial and boundary-masked.
        t = min((HW // 128) * 128, max_t)
    else:
        # Tiny spatial extent: full-extent block (valid per the (8,128) rule).
        return HW, budget

    # Megacore (v7x has 2 TensorCores): guarantee >= 2 total grid steps.
    if B * ((HW + t - 1) // t) < 2 and t >= 256:
        t = max(128, (t // 2) // 128 * 128)
    return t, budget


def normalize(x, power=2):
    """x: (B, C, H, W); L_p-normalize over dim=1 (channels), PyTorch semantics."""
    if not isinstance(power, int):
        # Keep the hot loop on the rsqrt path when callers pass 2.0 etc.
        if float(power).is_integer():
            power = int(power)

    B, C, H, W = x.shape
    HW = H * W
    x2 = x.reshape(B, C, HW)

    itemsize = jnp.dtype(x.dtype).itemsize
    T, budget = _pick_spatial_tile(B, C, HW, itemsize)
    grid = (B, pl.cdiv(HW, T))

    cap = _vmem_capacity_bytes()
    vmem_limit = int(min(cap - 2 * _MIB, budget + 8 * _MIB))

    cost = pl.CostEstimate(
        flops=4 * B * C * HW,
        transcendentals=B * HW,
        bytes_accessed=2 * B * C * HW * itemsize,
    )

    out = pl.pallas_call(
        functools.partial(_normalize_kernel, power=power),
        out_shape=jax.ShapeDtypeStruct((B, C, HW), x.dtype),
        grid_spec=pl.GridSpec(
            grid=grid,
            in_specs=[pl.BlockSpec((1, C, T), lambda b, h: (b, 0, h))],
            out_specs=pl.BlockSpec((1, C, T), lambda b, h: (b, 0, h)),
        ),
        compiler_params=pltpu.CompilerParams(
            dimension_semantics=("parallel", "parallel"),
            vmem_limit_bytes=vmem_limit,
        ),
        cost_estimate=cost,
    )(x2)

    return out.reshape(B, C, H, W)


if __name__ == "__main__":
    key = jax.random.PRNGKey(0)
    B, C, H, W = 2, 4, 16, 16
    x = jax.random.normal(key, (B, C, H, W), dtype=jnp.float32)

    out = normalize(x, power=2)
    out = jax.block_until_ready(out)

    # Reference (plain JAX, same semantics as the PyTorch module:
    # norm = sum((x + 1e-7)^p, dim=1)^(1/p); out = x / norm).
    norm_ref = jnp.sum((x + 1e-07) ** 2, axis=1, keepdims=True) ** 0.5
    ref = x / norm_ref

    assert out.shape == x.shape and out.dtype == x.dtype
    assert jnp.allclose(out, ref, atol=1e-5, rtol=1e-5)
    print("KERNEL_OK")
</pallas_src>

<mosaic_0001>
module attributes {stable_mosaic.version = 11 : i64} {
  func.func @_normalize_kernel(%arg0: i32, %arg1: i32, %arg2: memref<1x4x256xf32, #tpu.memory_space<vmem>>, %arg3: memref<1x4x256xf32, #tpu.memory_space<vmem>>) attributes {dimension_semantics = [#tpu.dimension_semantics<parallel>, #tpu.dimension_semantics<parallel>], iteration_bounds = array<i64: 2, 1>, scalar_prefetch = 0 : i64, scratch_operands = 0 : i64, tpu.core_type = #tpu.core_type<tc>, window_params = [{transform_indices = @transform_0, window_bounds = array<i64: 1, 4, 256>}, {transform_indices = @transform_1, window_bounds = array<i64: 1, 4, 256>}]} {
    %c0 = arith.constant 0 : index
    %c0_0 = arith.constant 0 : index
    %c0_1 = arith.constant 0 : index
    %0 = vector.load %arg2[%c0, %c0_0, %c0_1] : memref<1x4x256xf32, #tpu.memory_space<vmem>>, vector<1x4x256xf32>
    %cst = arith.constant 1.000000e-07 : f32
    %1 = vector.broadcast %cst : f32 to vector<1x4x256xf32>
    %2 = arith.addf %0, %1 : vector<1x4x256xf32>
    %3 = arith.mulf %2, %2 : vector<1x4x256xf32>
    %cst_2 = arith.constant dense<0.000000e+00> : vector<1x256xf32>
    %4 = vector.multi_reduction <add>, %3, %cst_2 [1] : vector<1x4x256xf32> to vector<1x256xf32>
    %5 = vector.shape_cast %4 : vector<1x256xf32> to vector<1x1x256xf32>
    %6 = math.rsqrt %5 : vector<1x1x256xf32>
    %7 = vector.broadcast %6 : vector<1x1x256xf32> to vector<1x4x256xf32>
    %8 = arith.mulf %0, %7 : vector<1x4x256xf32>
    %c0_3 = arith.constant 0 : index
    %c0_4 = arith.constant 0 : index
    %c0_5 = arith.constant 0 : index
    %9 = vector.load %arg3[%c0_3, %c0_4, %c0_5] : memref<1x4x256xf32, #tpu.memory_space<vmem>>, vector<1x4x256xf32>
    tpu.vector_store %arg3[%c0_3, %c0_4, %c0_5], %8 {strides = array<i32>} : memref<1x4x256xf32, #tpu.memory_space<vmem>>, vector<1x4x256xf32>,
    return
  }
  func.func @transform_0(%arg0: i32, %arg1: i32) -> (i32, i32, i32) {
    %c0_i32 = arith.constant 0 : i32
    %c0_i32_0 = arith.constant 0 : i32
    return %arg0, %c0_i32, %arg1 : i32, i32, i32
  }
  func.func @transform_1(%arg0: i32, %arg1: i32) -> (i32, i32, i32) {
    %c0_i32 = arith.constant 0 : i32
    %c0_i32_0 = arith.constant 0 : i32
    return %arg0, %c0_i32, %arg1 : i32, i32, i32
  }
}

</mosaic_0001>

<bundles_post_ra>
// kernel: tpu_custom_call.1
= control target key start
LH: loop header
LB: loop body
LE: loop exit
PB: predicated region body
PF: predicated region fallthrough
CT: control target
= control target key end

     0   :  { %6 = vsyncpa [#allocation3], 0  ;;  %s622_s0 = inlined_call_operand.hbm [shape: f32[2,4,256], index: 0, kind: input, shape index: {}]   ;;  %s623_s1 = inlined_call_operand.hbm [shape: f32[2,4,256], index: 1, kind: output, shape index: {}]  }
   0x1   :  { %8 = vsyncpa [#allocation3 + $0x1], 0 }
   0x2   :  { %9 = vsyncpa [#allocation4], 0 }
   0x3   :  { %11 = vsyncpa [#allocation4 + $0x1], 0  ;;  %s488_s6 = smov 0   ;;  %s490_s7 = smov 0  }
   0x4   :  { %s492_s8 = smov 0   ;;  %s494_s9 = smov 0  }
   0x5   :  { %s496_s10 = smov 0   ;;  %s498_s11 = smov 0  }
   0x6 LB: > { %s283_s12 = sadd.s32 4294967295, %s474_s11   ;;  %s284_s13 = sadd.s32 4294967294, %s474_s11   ;;  %s474_s11 = sphi %s498_s11, %s17_s11   ;;  %s470_s10 = sphi %s496_s10, %s635_s10   ;;  %s466_s9 = sphi %s494_s9, %s634_s9   ;;  %s462_s8 = sphi %s492_s8, %s633_s8   ;;  %s458_s7 = sphi %s490_s7, %s632_s7   ;;  %s454_s6 = sphi %s488_s6, %s631_s6  }
   0x7   : > { %s29_s14 = sadd.s32 1, %s470_s10  ;;  %s38_s15 = sadd.s32 1, %s462_s8 }
   0x8   : > { %p31_p0 = scmp.ge.s32.totalorder %s29_s14, 2  ;;  %p45_p1 = scmp.ne.s32.totalorder %s462_s8, %s458_s7 }
   0x9   : > { %p46_p2 = scmp.eq.s32.totalorder %s474_s11, 0  ;;  %p51_p3 = scmp.ne.s32.totalorder %s458_s7, %s454_s6 }
   0xa   : > { %s637_s14 = smov (%p31_p0, %s29_s14), 0  ;;  %p52_p5 = scmp.eq.s32.totalorder %s283_s12, 0 }
   0xb   : > { %p529_p4 = por %p46_p2, %p45_p1  ;;  %s33_s17 = ssub.s32 %s470_s10, %s637_s14 }
   0xc   : > { %p77_p6 = scmp.eq.s32.totalorder %s283_s12, 1  ;;  %p36_p7 = scmp.eq.s32.totalorder %s33_s17, 0 }
   0xd   : > { %p535_p8 = por %p52_p5, %p51_p3  ;;  %p83_p10 = scmp.eq.s32.totalorder %s284_s13, 1 }
   0xe   : > { %p539_p9 = por %p77_p6, %p45_p1  ;;  %p312_p13 = scmp.lt.s32.totalorder %s474_s11, 2 }
   0xf   : > { %s544_s20 = scalar_select %p36_p7, %s462_s8, %s38_s15  }
  0x10   : > { %p546_p11 = por %p83_p10, %p51_p3  ;;  %s103_s22 = sand.u32 1, %s462_s8  }
  0x11   : > { %s287_s23 = sshll.u32 %s103_s22, 3  ;;  %s298_s24 = sshll.u32 %s470_s10, 7 }
  0x12   : > { %s627_s21 = scalar_select %p546_p11, 1, 0 }
  0x13   : > { %s115_s27 = scalar_lea.hbm %s622_s0, %s298_s24  ;;  %s107_s28 = scalar_lea.vmem [#allocation2], %s287_s23 }
  0x14   : > { %s117_s29 = sshll.u32 %s107_s28, 4  ;;  %p559_p0 = pnand %p312_p13, %p529_p4  ;;  %s118_s29 = int_to_ptr.vmem [resolvable:$true] %s117_s29 }
  0x15   : > { %p290_p1 = scmp.ge.s32.totalorder %s474_s11, 1  ;;  %p122_p2 = scmp.lt.s32.totalorder %s474_s11, 3 }
  0x16   : > { %s104_s2 = scalar_lea.sflag [#allocation3], %s103_s22  ;;  %p368_p3 = pneg %p559_p0 }
  0x17   : > { %s379_s3 = scalar_lea.vmem %s118_s29, 128  ;;  %s476_s4 = smov [#allocation2]  }
  0x18   : > { %p380_p5 = scmp.ne.s32.totalorder %s118_s29, %s379_s3  ;;  %s384_s5 = sshll.u32 %s476_s4, 4  ;;  %s385_s5 = int_to_ptr.vmem [resolvable:$false] %s384_s5 }
  0x19   : > { %s386_s12 = scalar_lea.vmem %s385_s5, 256  ;;  %p387_p10 = scmp.lt.s32.totalorder %s118_s29, %s385_s5 }
  0x1a   : > { %p382_p6 = pnand %p380_p5, %p368_p3  ;;  %p388_p12 = scmp.lt.s32.totalorder %s386_s12, %s379_s3 }
  0x1c   : > { %p383_p7 = pneg %p382_p6  ;;  %p389_p4 = por %p388_p12, %p387_p10 }
  0x1e   : > { %p390_p13 = pnand %p389_p4, %p383_p7 }
  0x20   : > { %393 = shalt.err (!%p390_p13)
}
  0x21   : > { %307 = dma.hbm_to_vmem [thread:$0]  (!%p559_p0), %s115_s27, 128, %s118_s29, %s104_s2  }
  0x22   : > { %p123_p11 = pnand %p290_p1, %p122_p2 }
  0x23   : > { %s574_s13 = sand.u32 (!%p123_p11), 1, %s458_s7  }
  0x24   : > { %126 = sbr.rel (%p123_p11) target bundleno = 93 (0x5d), region = 24  ;;  %s291_s15 = sshll.u32 (!%p123_p11), %s574_s13, 3 }
  0x25   : > { %s129_s16 = scalar_lea.sflag (!%p123_p11), [#allocation3], %s574_s13  ;;  %s132_s17 = scalar_lea.vmem (!%p123_p11), [#allocation2], %s291_s15 }
  0x29   : > { %445 = dma.done.wait (%p535_p8), %s129_s16, 128  }
  0x2a   : > { %447 = vsyncadd (%p535_p8), %s129_s16, 4294967168  ;;  %v153_v0 = vld [vmem:[%s132_s17] sm:$0xff]  ;;  %vm159_vm0 = vcmask 1043456   ;;  %s150_s18 = scalar_lea.vmem [#allocation5], %s291_s15  ;;  %s299_s23 = sshll.u32 %s466_s9, 7 }
  0x2b   : > { %v154_v1 = vadd.f32 1e-07, %v153_v0  ;;  %s199_s22 = sshll.u32 %s150_s18, 4  ;;  %s197_s26 = scalar_lea.hbm %s623_s1, %s299_s23  ;;  %s200_s22 = int_to_ptr.vmem [resolvable:$true] %s199_s22 }
  0x2c   : > { %s183_s27 = scalar_lea.sflag [#allocation4], %s574_s13  ;;  %s394_s28 = scalar_lea.vmem %s200_s22, 128 }
  0x2d   : > { %v155_v2 = vmul.f32 %v154_v1, %v154_v1  ;;  %p395_p8 = scmp.ne.s32.totalorder %s200_s22, %s394_s28  ;;  %s477_s29 = smov [#allocation5]  }
  0x2e   : > { %s398_s30 = sshll.u32 %s477_s29, 4  ;;  %s399_s30 = int_to_ptr.vmem [resolvable:$false] %s398_s30 }
  0x2f   : > { %v157_v3 = vcombine.high %v155_v2, %v155_v2  ;;  %v160_v4 = vsel %vm159_vm0, %v155_v2, 0.0  ;;  %p396_p11 = pnand %p395_p8, %p539_p9  ;;  %s400_s2 = scalar_lea.vmem %s399_s30, 256 }
  0x30   : > { %v161_v5 = vrot.slane %v160_v4, 4  ;;  %p401_p0 = scmp.lt.s32.totalorder %s200_s22, %s399_s30  ;;  %p402_p1 = scmp.lt.s32.totalorder %s400_s2, %s394_s28 }
  0x31   : > { %v167_v6 = vsel %vm159_vm0, %v157_v3, 0.0  ;;  %p397_p12 = pneg %p396_p11 }
  0x32   : > { %v162_v7 = vadd.f32 %v161_v5, %v160_v4  ;;  %v168_v8 = vrot.slane %v167_v6, 4  ;;  %p403_p2 = por %p402_p1, %p401_p0 }
  0x34   : > { %v163_v9 = vrot.slane %v162_v7, 2  ;;  %v169_v10 = vadd.f32 %v168_v8, %v167_v6  ;;  %p404_p3 = pnand %p403_p2, %p397_p12 }
  0x36   : > { %v164_v11 = vadd.f32 %v163_v9, %v162_v7  ;;  %v170_v12 = vrot.slane %v169_v10, 2 }
  0x38   : > { %v165_v13 = vrot.slane %v164_v11, 1  ;;  %v171_v14 = vadd.f32 %v170_v12, %v169_v10 }
  0x3a   : > { %v166_v15 = vadd.f32 %v165_v13, %v164_v11  ;;  %v172_v16 = vrot.slane %v171_v14, 1 }
  0x3c   : > { %v173_v17 = vadd.f32 %v172_v16, %v171_v14  ;;  %362 = vrsqrt.f32 %v166_v15 }
  0x3e   : > { %364 = vrsqrt.f32 %v173_v17 }
  0x49   : > { %v363_v18 = vpop.eup %362 }
  0x4b   : > { %v365_v19 = vpop.eup %364 }
  0x4c   : > { %v178_v20 = vcombine.low %v363_v18, %v365_v19 }
  0x4e   : > { %v180_v21 = vmul.f32 %v178_v20, %v153_v0 }
  0x50   : > { %181 = vst [vmem:[%s150_s18] sm:$0xff] %v180_v21 }
  0x51   : > { %407 = shalt.err (!%p404_p3)
}
  0x52   : > { %s408_s9 = scalar_lea.hbm %s197_s26, 128  ;;  %s412_s5 = scalar_lea.hbm %s623_s1, 256 }
  0x53   : > { %p409_p5 = scmp.ne.s32.totalorder %s197_s26, %s408_s9  ;;  %p413_p10 = scmp.lt.s32.totalorder %s197_s26, %s623_s1 }
  0x54   : > { %p414_p4 = scmp.lt.s32.totalorder %s412_s5, %s408_s9 }
  0x55   : > { %p410_p6 = pnand %p409_p5, %p539_p9 }
  0x56   : > { %p415_p13 = por %p414_p4, %p413_p10 }
  0x57   : > { %p411_p7 = pneg %p410_p6 }
  0x59   : > { %p416_p8 = pnand %p415_p13, %p411_p7 }
  0x5b   : > { %419 = shalt.err (!%p416_p8)
}
  0x5c   : > { %302 = dma.vmem_to_hbm [thread:$0]  (%p539_p9), %s200_s22, 128, %s197_s26, %s183_s27  }
  0x5d PF: > { %s211_s15 = sand.u32 1, %s454_s6   ;;  %p629_p11 = scmp.ne.s32.totalorder %s627_s21, 0 }
  0x5e   : > { %p630_p12 = scmp.ge.s32.totalorder %s474_s11, 2  ;;  %s212_s16 = scalar_lea.sflag [#allocation4], %s211_s15 }
  0x60   : > { %p309_p0 = pnand %p630_p12, %p629_p11 }
  0x62   : > { %p310_p1 = pneg %p309_p0 }
  0x64   : > { %449 = dma.done.wait (%p310_p1), %s212_s16, 128  }
  0x65   : > { %451 = vsyncadd (%p310_p1), %s212_s16, 4294967168  ;;  %s17_s11 = sadd.s32 1, %s474_s11   ;;  %s631_s6 = smov %s458_s7 }
  0x66   : > { %p14_p2 = scmp.ge.s32.totalorder %s17_s11, 4   ;;  %s632_s7 = smov %s462_s8 }
  0x67   : > { %s633_s8 = smov %s544_s20  ;;  %s634_s9 = smov %s470_s10 }
  0x68   : > { %s635_s10 = smov %s637_s14  ;;  %16 = sbr.rel (!%p14_p2) target bundleno = 6 (0x6), region = 69 }
  0x6d   :  { %217 = vsyncpa [#allocation3], 1 }
  0x6e   :  { %219 = vsyncpa [#allocation3 + $0x1], 1 }
  0x6f   :  { %220 = vsyncpa [#allocation4], 1 }
  0x70   :  { %222 = vsyncpa [#allocation4 + $0x1], 1 }

</bundles_post_ra>
